<compile_context>
chip_gen: v7x
topology: tpu7x:2x2x1
jax: 0.10.0
libtpu: 0.0.40
codegen_flags: <defaults>
</compile_context>

<pallas_src>
import math

import jax
import jax.numpy as jnp
from jax.experimental import pallas as pl
from jax.experimental.pallas import tpu as pltpu

_INV_SQRT2 = 1.0 / math.sqrt(2.0)


def _round_up(x, m):
    return (x + m - 1) // m * m


def _geglu_kernel(x_ref, wh_ref, wg_ref, bh_ref, bg_ref, o_ref):
    """One (tm, tn) output tile: h * gelu_exact(gate)."""
    x = x_ref[...]
    # MXU matmuls with f32 accumulation (inputs may be bf16 fast path).
    h = jnp.dot(x, wh_ref[...], preferred_element_type=jnp.float32) + bh_ref[...]
    g = jnp.dot(x, wg_ref[...], preferred_element_type=jnp.float32) + bg_ref[...]
    # Exact (erf) GELU — matches torch.nn.functional.gelu default.
    gelu_g = 0.5 * g * (1.0 + jax.lax.erf(g * _INV_SQRT2))
    o_ref[...] = (h * gelu_g).astype(o_ref.dtype)


def geglu(x, w, b, *, tm=256, tn=None, compute_dtype=None):
    """GEGLU forward.

    x: (B, S, dim_in)
    w: (dim_in, 2*dim_out)   (transposed vs. torch's (2*dim_out, dim_in))
    b: (2*dim_out,)
    compute_dtype: optional matmul-input dtype (e.g. jnp.bfloat16 for MXU peak).
    returns: (B, S, dim_out)
    """
    B, S, dim_in = x.shape
    dim_out = w.shape[1] // 2
    M = B * S
    x2d = x.reshape(M, dim_in)

    # ---- tile sizes --------------------------------------------------------
    # Lane-dense output: pad dim_out up to a multiple of 128.
    dpad = _round_up(dim_out, 128)
    if tn is None:
        tn = min(dpad, 512)
        while dpad % tn:
            tn -= 128
    assert tn % 128 == 0 and dpad % tn == 0
    n_tiles = dpad // tn

    # Row tile: fixed-size (default 256), multiple of 8, capped at padded M.
    tm = _round_up(min(tm, _round_up(M, 8)), 8)
    Mp = _round_up(M, tm)
    if Mp != M:
        x2d = jnp.pad(x2d, ((0, Mp - M), (0, 0)))

    # ---- weight / bias layout ----------------------------------------------
    # Aligned dims: pass the fused weight straight through, address the two
    # halves with BlockSpec index_maps (no HBM copies).  Only non-x128 dims
    # (toy sizes) take the zero-padding path.
    if dpad == dim_out:
        w_full = w
        b_full = b.reshape(1, 2 * dim_out)
    else:
        pad = dpad - dim_out
        w_full = jnp.concatenate(
            [jnp.pad(w[:, :dim_out], ((0, 0), (0, pad))),
             jnp.pad(w[:, dim_out:], ((0, 0), (0, pad)))], axis=1)
        b_full = jnp.concatenate(
            [jnp.pad(b[:dim_out], (0, pad)),
             jnp.pad(b[dim_out:], (0, pad))]).reshape(1, 2 * dpad)

    if compute_dtype is not None:
        x2d = x2d.astype(compute_dtype)
        w_full = w_full.astype(compute_dtype)
    b_full = b_full.astype(jnp.float32)

    grid = (n_tiles, Mp // tm)  # N slow, M fast -> weight slice stays resident

    cost = pl.CostEstimate(
        flops=2 * Mp * dim_in * 2 * dpad + 6 * Mp * dpad,
        transcendentals=Mp * dpad,
        bytes_accessed=(x2d.size * x2d.dtype.itemsize
                        + w_full.size * w_full.dtype.itemsize
                        + b_full.size * b_full.dtype.itemsize
                        + Mp * dpad * x.dtype.itemsize),
    )

    out2d = pl.pallas_call(
        _geglu_kernel,
        out_shape=jax.ShapeDtypeStruct((Mp, dpad), x.dtype),
        grid_spec=pltpu.PrefetchScalarGridSpec(
            num_scalar_prefetch=0,
            grid=grid,
            in_specs=[
                pl.BlockSpec((tm, dim_in), lambda j, i: (i, 0)),            # x rows
                pl.BlockSpec((dim_in, tn), lambda j, i: (0, j)),            # W  (h half)
                pl.BlockSpec((dim_in, tn), lambda j, i: (0, j + n_tiles)),  # W  (gate half)
                pl.BlockSpec((1, tn), lambda j, i: (0, j)),                 # b  (h half)
                pl.BlockSpec((1, tn), lambda j, i: (0, j + n_tiles)),       # b  (gate half)
            ],
            out_specs=pl.BlockSpec((tm, tn), lambda j, i: (i, j)),
        ),
        compiler_params=pltpu.CompilerParams(
            dimension_semantics=("parallel", "parallel"),
            vmem_limit_bytes=64 * 1024 * 1024,
        ),
        cost_estimate=cost,
    )(x2d, w_full, w_full, b_full, b_full)

    return out2d[:M, :dim_out].reshape(B, S, dim_out)


def _reference(x, w, b):
    dim_out = w.shape[1] // 2
    proj = jnp.einsum("bsi,io->bso", x, w) + b
    h, g = proj[..., :dim_out], proj[..., dim_out:]
    return h * (0.5 * g * (1.0 + jax.lax.erf(g * _INV_SQRT2)))


if __name__ == "__main__":
    # Small shapes consistent with the module: (batch, seq, dim_in) -> (batch, seq, dim_out)
    batch, seq, dim_in, dim_out = 2, 8, 32, 32

    key = jax.random.PRNGKey(0)
    kx, kw, kb = jax.random.split(key, 3)

    x = jax.random.normal(kx, (batch, seq, dim_in), dtype=jnp.float32)

    # Deterministic nn.Linear-style init: U(-1/sqrt(dim_in), 1/sqrt(dim_in)).
    bound = 1.0 / math.sqrt(dim_in)
    w = jax.random.uniform(kw, (dim_in, 2 * dim_out), jnp.float32, -bound, bound)
    b = jax.random.uniform(kb, (2 * dim_out,), jnp.float32, -bound, bound)

    ref = _reference(x, w, b)

    # Exact-precision (f32) path — tight check vs reference / PyTorch semantics.
    out = jax.block_until_ready(geglu(x, w, b))
    assert out.shape == (batch, seq, dim_out)
    assert jnp.allclose(out, ref, atol=1e-5, rtol=1e-5), "f32 mismatch vs reference"

    # bf16 fast path (MXU-peak dtype on v5e/v6e/v7x), f32 accumulation — loose check.
    out_bf16 = jax.block_until_ready(geglu(x, w, b, compute_dtype=jnp.bfloat16))
    assert out_bf16.shape == (batch, seq, dim_out)
    assert jnp.allclose(out_bf16, ref, atol=3e-2, rtol=3e-2), "bf16 mismatch vs reference"

    print("KERNEL_OK")
</pallas_src>

<mosaic_0001>
module attributes {stable_mosaic.version = 11 : i64} {
  func.func @_geglu_kernel(%arg0: i32, %arg1: i32, %arg2: memref<16x32xf32, #tpu.memory_space<vmem>>, %arg3: memref<32x128xf32, #tpu.memory_space<vmem>>, %arg4: memref<32x128xf32, #tpu.memory_space<vmem>>, %arg5: memref<1x128xf32, #tpu.memory_space<vmem>>, %arg6: memref<1x128xf32, #tpu.memory_space<vmem>>, %arg7: memref<16x128xf32, #tpu.memory_space<vmem>>) attributes {dimension_semantics = [#tpu.dimension_semantics<parallel>, #tpu.dimension_semantics<parallel>], iteration_bounds = array<i64: 1, 1>, scalar_prefetch = 0 : i64, scratch_operands = 0 : i64, tpu.core_type = #tpu.core_type<tc>, window_params = [{transform_indices = @transform_0, window_bounds = array<i64: 16, 32>}, {transform_indices = @transform_1, window_bounds = array<i64: 32, 128>}, {transform_indices = @transform_2, window_bounds = array<i64: 32, 128>}, {transform_indices = @transform_3, window_bounds = array<i64: 1, 128>}, {transform_indices = @transform_4, window_bounds = array<i64: 1, 128>}, {transform_indices = @transform_5, window_bounds = array<i64: 16, 128>}]} {
    %c0 = arith.constant 0 : index
    %c0_0 = arith.constant 0 : index
    %0 = vector.load %arg2[%c0, %c0_0] : memref<16x32xf32, #tpu.memory_space<vmem>>, vector<16x32xf32>
    %c0_1 = arith.constant 0 : index
    %c0_2 = arith.constant 0 : index
    %1 = vector.load %arg3[%c0_1, %c0_2] : memref<32x128xf32, #tpu.memory_space<vmem>>, vector<32x128xf32>
    %cst = arith.constant dense<0.000000e+00> : vector<16x128xf32>
    %2 = tpu.matmul %0, %1, %cst {dimension_numbers = #tpu.dot_dimension_numbers<[1], [0], [0], [1], [0, 0, 1, 1], [], []>} : vector<16x32xf32>, vector<32x128xf32>, vector<16x128xf32> -> vector<16x128xf32>
    %c0_3 = arith.constant 0 : index
    %c0_4 = arith.constant 0 : index
    %3 = vector.load %arg5[%c0_3, %c0_4] : memref<1x128xf32, #tpu.memory_space<vmem>>, vector<1x128xf32>
    %4 = vector.broadcast %3 : vector<1x128xf32> to vector<16x128xf32>
    %5 = arith.addf %2, %4 : vector<16x128xf32>
    %c0_5 = arith.constant 0 : index
    %c0_6 = arith.constant 0 : index
    %6 = vector.load %arg4[%c0_5, %c0_6] : memref<32x128xf32, #tpu.memory_space<vmem>>, vector<32x128xf32>
    %cst_7 = arith.constant dense<0.000000e+00> : vector<16x128xf32>
    %7 = tpu.matmul %0, %6, %cst_7 {dimension_numbers = #tpu.dot_dimension_numbers<[1], [0], [0], [1], [0, 0, 1, 1], [], []>} : vector<16x32xf32>, vector<32x128xf32>, vector<16x128xf32> -> vector<16x128xf32>
    %c0_8 = arith.constant 0 : index
    %c0_9 = arith.constant 0 : index
    %8 = vector.load %arg6[%c0_8, %c0_9] : memref<1x128xf32, #tpu.memory_space<vmem>>, vector<1x128xf32>
    %9 = vector.broadcast %8 : vector<1x128xf32> to vector<16x128xf32>
    %10 = arith.addf %7, %9 : vector<16x128xf32>
    %cst_10 = arith.constant 5.000000e-01 : f32
    %11 = vector.broadcast %cst_10 : f32 to vector<16x128xf32>
    %12 = arith.mulf %11, %10 : vector<16x128xf32>
    %cst_11 = arith.constant 0.707106769 : f32
    %13 = vector.broadcast %cst_11 : f32 to vector<16x128xf32>
    %14 = arith.mulf %10, %13 : vector<16x128xf32>
    %15 = math.erf %14 : vector<16x128xf32>
    %cst_12 = arith.constant 1.000000e+00 : f32
    %16 = vector.broadcast %cst_12 : f32 to vector<16x128xf32>
    %17 = arith.addf %16, %15 : vector<16x128xf32>
    %18 = arith.mulf %12, %17 : vector<16x128xf32>
    %19 = arith.mulf %5, %18 : vector<16x128xf32>
    %c0_13 = arith.constant 0 : index
    %c0_14 = arith.constant 0 : index
    %20 = vector.load %arg7[%c0_13, %c0_14] : memref<16x128xf32, #tpu.memory_space<vmem>>, vector<16x128xf32>
    tpu.vector_store %arg7[%c0_13, %c0_14], %19 {strides = array<i32>} : memref<16x128xf32, #tpu.memory_space<vmem>>, vector<16x128xf32>,
    return
  }
  func.func @transform_0(%arg0: i32, %arg1: i32) -> (i32, i32) {
    %c0_i32 = arith.constant 0 : i32
    %c0_i32_0 = arith.constant 0 : i32
    return %arg1, %c0_i32 : i32, i32
  }
  func.func @transform_1(%arg0: i32, %arg1: i32) -> (i32, i32) {
    %c0_i32 = arith.constant 0 : i32
    %c0_i32_0 = arith.constant 0 : i32
    return %c0_i32, %arg0 : i32, i32
  }
  func.func @transform_2(%arg0: i32, %arg1: i32) -> (i32, i32) {
    %c1_i32 = arith.constant 1 : i32
    %0 = arith.addi %arg0, %c1_i32 : i32
    %c0_i32 = arith.constant 0 : i32
    %c0_i32_0 = arith.constant 0 : i32
    return %c0_i32, %0 : i32, i32
  }
  func.func @transform_3(%arg0: i32, %arg1: i32) -> (i32, i32) {
    %c0_i32 = arith.constant 0 : i32
    %c0_i32_0 = arith.constant 0 : i32
    return %c0_i32, %arg0 : i32, i32
  }
  func.func @transform_4(%arg0: i32, %arg1: i32) -> (i32, i32) {
    %c1_i32 = arith.constant 1 : i32
    %0 = arith.addi %arg0, %c1_i32 : i32
    %c0_i32 = arith.constant 0 : i32
    %c0_i32_0 = arith.constant 0 : i32
    return %c0_i32, %0 : i32, i32
  }
  func.func @transform_5(%arg0: i32, %arg1: i32) -> (i32, i32) {
    %c0_i32 = arith.constant 0 : i32
    return %arg1, %arg0 : i32, i32
  }
}

</mosaic_0001>

<bundles_post_ra>
// kernel: tpu_custom_call.1
= control target key start
LH: loop header
LB: loop body
LE: loop exit
PB: predicated region body
PF: predicated region fallthrough
CT: control target
= control target key end

     0   :  { %10 = vsyncpa [#allocation3], 0  ;;  %s666_s0 = inlined_call_operand.hbm [shape: f32[16,32], index: 0, kind: input, shape index: {}]   ;;  %s667_s1 = inlined_call_operand.hbm [shape: f32[32,256], index: 1, kind: input, shape index: {}]   ;;  %s668_s2 = inlined_call_operand.hbm [shape: f32[32,256], index: 2, kind: input, shape index: {}]   ;;  %s669_s3 = inlined_call_operand.hbm [shape: f32[1,256], index: 3, kind: input, shape index: {}]   ;;  %s670_s4 = inlined_call_operand.hbm [shape: f32[1,256], index: 4, kind: input, shape index: {}]   ;;  %s671_s5 = inlined_call_operand.hbm [shape: f32[16,128], index: 5, kind: output, shape index: {}]  }
   0x1   :  { %11 = vsyncpa [#allocation6], 0 }
   0x2   :  { %12 = vsyncpa [#allocation9], 0 }
   0x3   :  { %13 = vsyncpa [#allocation4], 0  ;;  %s524_s18 = smov [#allocation5]   ;;  %s525_s20 = smov [#allocation8]  }
   0x4   :  { %s31_s19 = sshll.u32 %s524_s18, 4  ;;  %s59_s21 = sshll.u32 %s525_s20, 4  ;;  %s32_s19 = int_to_ptr.vmem [resolvable:$true] %s31_s19  ;;  %s60_s21 = int_to_ptr.vmem [resolvable:$true] %s59_s21 }
   0x5   :  { %s378_s24 = scalar_lea.hbm %s667_s1, 512  ;;  %s380_s29 = scalar_lea.hbm %s667_s1, 1024 }
   0x6   :  { %p379_p0 = scmp.ne.s32.totalorder %s667_s1, %s378_s24  ;;  %p381_p1 = scmp.lt.u32.totalorder %s380_s29, %s378_s24 }
   0x7   :  { %p382_p2 = scmp.lt.u32.totalorder %s378_s24, %s667_s1 }
   0x9   :  { %p383_p3 = por %p382_p2, %p381_p1 }
   0xb   :  { %p384_p4 = pnand %p383_p3, %p379_p0 }
   0xd   :  { %387 = shalt.err (!%p384_p4)
}
   0xe   :  { %s388_s7 = scalar_lea.vmem %s32_s19, 512  ;;  %p393_p6 = scmp.lt.s32.totalorder %s32_s19, %s32_s19 }
   0xf   :  { %p389_p5 = scmp.ne.s32.totalorder %s32_s19, %s388_s7  ;;  %p394_p7 = scmp.lt.s32.totalorder %s388_s7, %s388_s7 }
  0x11   :  { %p395_p8 = por %p394_p7, %p393_p6 }
  0x13   :  { %p396_p9 = pnand %p395_p8, %p389_p5 }
  0x15   :  { %399 = shalt.err (!%p396_p9)
}
  0x16   :  { %s526_s8 = smov 256   ;;  %s527_s9 = smov 128  }
  0x17   :  { %s528_s10 = smov 8   ;;  %s400_s15 = scalar_lea.hbm %s669_s3, 16 }
  0x18   :  { %37 = dma.hbm_to_vmem [thread:$0]  %s667_s1, 512, %s32_s19, [#allocation6], %s526_s8, %s527_s9, %s528_s10  }
  0x19   :  { %p401_p10 = scmp.ne.s32.totalorder %s669_s3, %s400_s15  ;;  %s402_s22 = scalar_lea.hbm %s669_s3, 32 }
  0x1a   :  { %p403_p11 = scmp.lt.u32.totalorder %s402_s22, %s400_s15  ;;  %p404_p12 = scmp.lt.u32.totalorder %s400_s15, %s669_s3 }
  0x1c   :  { %p405_p13 = por %p404_p12, %p403_p11 }
  0x1e   :  { %p406_p0 = pnand %p405_p13, %p401_p10 }
  0x20   :  { %409 = shalt.err (!%p406_p0)
}
  0x21   :  { %s410_s1 = scalar_lea.vmem %s60_s21, 16  ;;  %s414_s19 = scalar_lea.vmem %s60_s21, 32 }
  0x22   :  { %p411_p1 = scmp.ne.s32.totalorder %s60_s21, %s410_s1  ;;  %p415_p2 = scmp.lt.s32.totalorder %s60_s21, %s60_s21 }
  0x23   :  { %p416_p3 = scmp.lt.s32.totalorder %s414_s19, %s410_s1 }
  0x25   :  { %p417_p4 = por %p416_p3, %p415_p2 }
  0x27   :  { %p418_p5 = pnand %p417_p4, %p411_p1 }
  0x29   :  { %421 = shalt.err (!%p418_p5)
}
  0x2a   :  { %62 = dma.hbm_to_vmem [thread:$0]  %s669_s3, 16, %s60_s21, [#allocation9]  }
  0x2b   :  { %s529_s27 = smov [#allocation2]   ;;  %s599_s6 = scalar_lea.hbm %s668_s2, 128 }
  0x2c   :  { %s19_s28 = sshll.u32 %s529_s27, 4  ;;  %s422_s12 = scalar_lea.hbm %s666_s0, 256  ;;  %s20_s28 = int_to_ptr.vmem [resolvable:$true] %s19_s28 }
  0x2d   :  { %p423_p6 = scmp.ne.s32.totalorder %s666_s0, %s422_s12  ;;  %p426_p7 = scmp.lt.u32.totalorder %s422_s12, %s666_s0 }
  0x2f   :  { %p428_p8 = pnand %p426_p7, %p423_p6 }
  0x31   :  { %431 = shalt.err (!%p428_p8)
}
  0x32   :  { %s432_s3 = scalar_lea.vmem %s20_s28, 256  ;;  %p437_p10 = scmp.lt.s32.totalorder %s20_s28, %s20_s28 }
  0x33   :  { %p433_p9 = scmp.ne.s32.totalorder %s20_s28, %s432_s3  ;;  %p438_p11 = scmp.lt.s32.totalorder %s432_s3, %s432_s3 }
  0x35   :  { %p439_p12 = por %p438_p11, %p437_p10 }
  0x37   :  { %p440_p13 = pnand %p439_p12, %p433_p9 }
  0x39   :  { %443 = shalt.err (!%p440_p13)
}
  0x3a   :  { %25 = dma.hbm_to_vmem [thread:$0]  %s666_s0, 256, %s20_s28, [#allocation3], %s527_s9, %s527_s9, %s528_s10  }
  0x3b   :  { %s530_s18 = smov [#allocation7]   ;;  %s619_s24 = scalar_lea.hbm %s670_s4, 16 }
  0x3c   :  { %s46_s20 = sshll.u32 %s530_s18, 4  ;;  %s468_s25 = scalar_lea.hbm %s668_s2, 640  ;;  %s47_s20 = int_to_ptr.vmem [resolvable:$true] %s46_s20 }
  0x3d   :  { %p445_p0 = scmp.ne.s32.totalorder %s599_s6, %s468_s25  ;;  %s446_s29 = scalar_lea.hbm %s668_s2, 1024 }
  0x3e   :  { %p447_p1 = scmp.lt.u32.totalorder %s599_s6, %s668_s2  ;;  %p448_p2 = scmp.lt.u32.totalorder %s446_s29, %s468_s25 }
  0x3f   :  { %p450_p4 = scmp.lt.u32.totalorder %s468_s25, %s599_s6 }
  0x40   :  { %p449_p3 = por %p448_p2, %p447_p1 }
  0x42   :  { %p451_p5 = por %p450_p4, %p449_p3 }
  0x44   :  { %p452_p6 = pnand %p451_p5, %p445_p0 }
  0x46   :  { %455 = shalt.err (!%p452_p6)
}
  0x47   :  { %s456_s0 = scalar_lea.vmem %s47_s20, 512  ;;  %p461_p8 = scmp.lt.s32.totalorder %s47_s20, %s47_s20 }
  0x48   :  { %p457_p7 = scmp.ne.s32.totalorder %s47_s20, %s456_s0  ;;  %p462_p9 = scmp.lt.s32.totalorder %s456_s0, %s456_s0 }
  0x4a   :  { %p463_p10 = por %p462_p9, %p461_p8 }
  0x4c   :  { %p464_p11 = pnand %p463_p10, %p457_p7 }
  0x4e   :  { %467 = shalt.err (!%p464_p11)
}
  0x4f   :  { %52 = dma.hbm_to_vmem [thread:$0]  %s599_s6, 512, %s47_s20, [#allocation6], %s526_s8, %s527_s9, %s528_s10  }
  0x50   :  { %s531_s2 = smov [#allocation10]   ;;  %s493_s13 = scalar_lea.hbm %s670_s4, 32 }
  0x51   :  { %s72_s28 = sshll.u32 %s531_s2, 4  ;;  %p470_p12 = scmp.ne.s32.totalorder %s619_s24, %s493_s13  ;;  %s73_s28 = int_to_ptr.vmem [resolvable:$true] %s72_s28 }
  0x52   :  { %p472_p13 = scmp.lt.u32.totalorder %s619_s24, %s670_s4  ;;  %p473_p0 = scmp.lt.u32.totalorder %s493_s13, %s493_s13 }
  0x53   :  { %p475_p2 = scmp.lt.u32.totalorder %s493_s13, %s619_s24 }
  0x54   :  { %p474_p1 = por %p473_p0, %p472_p13 }
  0x56   :  { %p476_p3 = por %p475_p2, %p474_p1 }
  0x58   :  { %p477_p4 = pnand %p476_p3, %p470_p12 }
  0x5a   :  { %480 = shalt.err (!%p477_p4)
}
  0x5b   :  { %s481_s16 = scalar_lea.vmem %s73_s28, 16  ;;  %s485_s8 = scalar_lea.vmem %s73_s28, 32 }
  0x5c   :  { %p482_p5 = scmp.ne.s32.totalorder %s73_s28, %s481_s16  ;;  %p486_p6 = scmp.lt.s32.totalorder %s73_s28, %s73_s28 }
  0x5d   :  { %p487_p7 = scmp.lt.s32.totalorder %s485_s8, %s481_s16 }
  0x5f   :  { %p488_p8 = por %p487_p7, %p486_p6 }
  0x61   :  { %p489_p9 = pnand %p488_p8, %p482_p5 }
  0x63   :  { %492 = shalt.err (!%p489_p9)
}
  0x64   :  { %75 = dma.hbm_to_vmem [thread:$0]  %s619_s24, 16, %s73_s28, [#allocation9]  }
  0x65   :  { %516 = dma.done.wait [#allocation3], 256  }
  0x66   :  { %517 = vsyncadd [#allocation3], 4294967040 }
  0x67   :  { %518 = dma.done.wait [#allocation6], 1024  }
  0x68   :  { %519 = vsyncadd [#allocation6], 4294966272 }
  0x69   :  { %520 = dma.done.wait [#allocation9], 32  }
  0x6a   :  { %521 = vsyncadd [#allocation9], 4294967264  ;;  %vm106_vm0 = vcmask 261120   ;;  %v188_v0 = vld [vmem:[#allocation7] sm:$0xff]  ;;  %v189_v1 = vld [vmem:[#allocation7 + $0x8] sm:$0xff]  ;;  %s532_s4 = smov [#allocation11]  }
  0x6b   :  { %v190_v2 = vld [vmem:[#allocation7 + $0x10] sm:$0xff]  ;;  %v357_v3 = vpack.c.bf16 %v189_v1, %v188_v0  ;;  %v191_v4 = vld [vmem:[#allocation7 + $0x18] sm:$0xff]  ;;  %v95_v7 = vld [vmem:[#allocation5] sm:$0xff]  ;;  %s293_s6 = sshll.u32 %s532_s4, 4  ;;  %s294_s6 = int_to_ptr.vmem [resolvable:$true] %s293_s6 }
  0x6c   :  { %v93_v5 = vld [vmem:[#allocation2] sm:$0xff]  ;;  %v361_v6 = vpack.c.bf16 %v191_v4, %v190_v2  ;;  %v96_v8 = vld [vmem:[#allocation5 + $0x8] sm:$0xff]  ;;  %v98_v11 = vld [vmem:[#allocation5 + $0x18] sm:$0xff]  ;;  %s494_s3 = scalar_lea.vmem %s294_s6, 256  ;;  %p499_p11 = scmp.lt.s32.totalorder %s294_s6, %s294_s6 }
  0x6d   :  { %346 = vmatprep.mubr.msk.f32.mxu1 %vm106_vm0, %v93_v5  ;;  %v97_v9 = vld [vmem:[#allocation5 + $0x10] sm:$0xff]  ;;  %335 = vmatprep.mubr.msk.f32.mxu0 %vm106_vm0, %v93_v5  ;;  %v349_v10 = vpack.c.bf16 %v96_v8, %v95_v7  ;;  %v94_v13 = vld [vmem:[#allocation2 + $0x8] sm:$0xff]  ;;  %v312_v14 = vld [vmem:[#allocation10] ss:$0 sm:$0xff]  ;;  %p495_p10 = scmp.ne.s32.totalorder %s294_s6, %s494_s3  ;;  %p500_p12 = scmp.lt.s32.totalorder %s494_s3, %s494_s3 }
  0x6e   :  { %358 = vmatprep.subr.bf16.mxu1 %v357_v3  ;;  %v353_v12 = vpack.c.bf16 %v98_v11, %v97_v9  ;;  %v309_v23 = vld [vmem:[#allocation8] ss:$0 sm:$0xff] }
  0x6f   :  { %360 = vmatpush3.bf16.msra.mxu1 %v357_v3  ;;  %350 = vmatprep.subr.bf16.mxu0 %v349_v10  ;;  %p501_p13 = por %p500_p12, %p499_p11 }
  0x70   :  { %362 = vmatprep.subr.bf16.mxu1 %v361_v6  ;;  %352 = vmatpush3.bf16.msra.mxu0 %v349_v10 }
  0x71   :  { %354 = vmatprep.subr.bf16.mxu0 %v353_v12  ;;  %p502_p0 = pnand %p501_p13, %p495_p10 }
  0x73   :  { %364 = vmatpush3.bf16.msra.mxu1 %v361_v6 }
  0x74   :  { %356 = vmatpush3.bf16.msra.mxu0 %v353_v12 }
  0x76   :  { %347 = vmatmul.mubr.msk.f32.vlgmr.msra.gmra.mrb[0].mxu1 %vm106_vm0, %v94_v13 }
  0x77   :  { %336 = vmatmul.mubr.msk.f32.vlgmr.msra.gmra.mrb[0].mxu0 %vm106_vm0, %v94_v13 }
 0x149   :  { %v348_v15 = vpop.f32.mrb[0].mxu1 }
 0x14a   :  { %v271_v16 = vadd.f32 %v348_v15, %v312_v14  ;;  %v265_v17 = vpop.f32.mrb[1].mxu1  ;;  %v337_v19 = vpop.f32.mrb[0].mxu0 }
 0x14b   :  { %v266_v18 = vadd.f32 %v312_v14, %v265_v17  ;;  %v179_v21 = vpop.f32.mrb[1].mxu0  ;;  %v185_v28 = vadd.f32 %v337_v19, %v309_v23 }
 0x14c   :  { %v277_v20 = vmul.f32 0.70710677, %v271_v16  ;;  %v275_v26 = vmul.f32 0.5, %v271_v16  ;;  %v180_v31 = vadd.f32 %v309_v23, %v179_v21 }
 0x14d   :  { %v276_v22 = vmul.f32 0.70710677, %v266_v18  ;;  %v274_v29 = vmul.f32 0.5, %v266_v18 }
 0x14e   :  { %374 = verf.f32 %v277_v20 }
 0x14f   :  { %376 = verf.f32 %v276_v22 }
 0x158   :  { %v375_v24 = vpop.eup %374 }
 0x159   :  { %v377_v25 = vpop.eup %376  ;;  %v281_v27 = vadd.f32 1.0, %v375_v24 }
 0x15a   :  { %v280_v30 = vadd.f32 1.0, %v377_v25 }
 0x15b   :  { %v283_v32 = vmul.f32 %v281_v27, %v275_v26 }
 0x15c   :  { %v282_v33 = vmul.f32 %v280_v30, %v274_v29 }
 0x15d   :  { %v285_v34 = vmul.f32 %v283_v32, %v185_v28 }
 0x15e   :  { %v284_v35 = vmul.f32 %v282_v33, %v180_v31 }
 0x15f   :  { %287 = vst [vmem:[#allocation11 + $0x8] sm:$0xff] %v285_v34 }
 0x160   :  { %286 = vst [vmem:[#allocation11] sm:$0xff] %v284_v35 }
 0x161   :  { %505 = shalt.err (!%p502_p0)
}
 0x162   :  { %s506_s18 = scalar_lea.hbm %s671_s5, 256 }
 0x163   :  { %p507_p1 = scmp.ne.s32.totalorder %s671_s5, %s506_s18  ;;  %p510_p2 = scmp.lt.u32.totalorder %s506_s18, %s671_s5 }
 0x165   :  { %p512_p3 = pnand %p510_p2, %p507_p1 }
 0x167   :  { %515 = shalt.err (!%p512_p3)
}
 0x168   :  { %299 = dma.vmem_to_hbm [thread:$0]  %s294_s6, 256, %s671_s5, [#allocation4], %s527_s9, %s527_s9, %s528_s10  }
 0x169   :  { %522 = dma.done.wait [#allocation4], 256  }
 0x16a   :  { %523 = vsyncadd [#allocation4], 4294967040 }
 0x16b   :  { %303 = vsyncpa [#allocation3], 1 }
 0x16c   :  { %304 = vsyncpa [#allocation6], 1 }
 0x16d   :  { %305 = vsyncpa [#allocation9], 1 }
 0x16e   :  { %306 = vsyncpa [#allocation4], 1 }

</bundles_post_ra>
